<compile_context>
chip_gen: v7x
topology: tpu7x:2x2x1
jax: 0.10.0
libtpu: 0.0.40
codegen_flags: <defaults>
</compile_context>

<pallas_src>
import functools

import jax
import jax.numpy as jnp
from jax.experimental import pallas as pl
from jax.experimental.pallas import tpu as pltpu


_GRID_MIN_BATCH = 256            # below this, use the single grid-less tile
_VMEM_TILE_BUDGET = 12 << 20     # bytes for double-buffered x + h tiles


def _round_up(x, m):
    return (x + m - 1) // m * m


def _cdiv(a, b):
    return -(-a // b)


def _two_layer_nn_kernel(x_ref, w1_ref, b1_ref, w2_ref, b2_ref, h_ref,
                         *, compute_dtype):
    """h = relu(x @ W1 + b1) @ W2 + b2 on one batch tile (all refs in VMEM)."""
    x = x_ref[...]
    if compute_dtype is not None:
        # In-kernel cast: free VPU work hidden under the input DMA.
        x = x.astype(compute_dtype)
    # First layer on the MXU with f32 accumulation; bias + ReLU on the f32 acc.
    z = jnp.dot(x, w1_ref[...], preferred_element_type=jnp.float32)
    z = jnp.maximum(z + b1_ref[...], 0.0)          # broadcast [1, H] once
    # Second layer kept in f32 (w2 up-cast in VMEM is negligible; keeps the
    # bf16 path numerically close to the f32 reference).
    h = jnp.dot(z, w2_ref[...].astype(jnp.float32),
                preferred_element_type=jnp.float32)
    h_ref[...] = (h + b2_ref[...]).astype(h_ref.dtype)   # broadcast [1, O] once


def two_layer_nn(x, w1, b1, w2, b2, *, block_batch=4096, compute_dtype=None):
    """Pallas wrapper for TwoLayerNN.forward.

    x:  [batch, input_size]
    w1: [input_size, hidden_size]   b1: [hidden_size] or [1, hidden_size]
    w2: [hidden_size, output_size]  b2: [output_size] or [1, output_size]
    Returns h: [batch, output_size] in float32.

    Weights may already be stored in a low-precision dtype (e.g. bf16);
    `compute_dtype` only controls the in-kernel cast of x for the first matmul.
    """
    batch, in_size = x.shape
    hidden = w1.shape[1]
    out_size = w2.shape[1]

    b1 = b1.reshape(1, hidden).astype(jnp.float32)
    b2 = b2.reshape(1, out_size).astype(jnp.float32)

    kernel = functools.partial(_two_layer_nn_kernel, compute_dtype=compute_dtype)

    batch8 = _round_up(batch, 8)

    if batch8 < _GRID_MIN_BATCH:
        # Tiny batch: single grid-less call, whole arrays VMEM-resident.
        batch_p = batch8
        x_p = jnp.pad(x, ((0, batch_p - batch), (0, 0))) if batch_p != batch else x
        vmem_spec = pl.BlockSpec(memory_space=pltpu.MemorySpace.VMEM)
        h_p = pl.pallas_call(
            kernel,
            out_shape=jax.ShapeDtypeStruct((batch_p, out_size), jnp.float32),
            in_specs=[vmem_spec] * 5,
            out_specs=vmem_spec,
        )(x_p, w1, b1, w2, b2)
        return h_p[:batch] if batch_p != batch else h_p

    # ---- Grid path: tile only the batch axis ----------------------------------
    # Cap the batch tile so double-buffered x + h tiles stay inside a
    # conservative VMEM budget (safe on v5e 16 MiB scoped / v7x 64 MiB physical).
    per_row_bytes = 2 * (in_size * x.dtype.itemsize + out_size * 4)
    max_tb = max(8, (_VMEM_TILE_BUDGET // max(per_row_bytes, 1)) // 8 * 8)
    tb_cap = min(_round_up(block_batch, 8), max_tb)

    # Always use >= 2 blocks so the "parallel" batch axis can shard across both
    # v7x TensorCores (harmless serial loop on single-TC v5e/v6e).
    num_blocks = max(2, _cdiv(batch8, tb_cap))
    tb = _round_up(_cdiv(batch8, num_blocks), 8)
    batch_p = tb * num_blocks

    x_p = jnp.pad(x, ((0, batch_p - batch), (0, 0))) if batch_p != batch else x

    # VMEM estimate: resident weights/biases + double-buffered x/h tiles.
    weight_bytes = (w1.size * w1.dtype.itemsize + w2.size * w2.dtype.itemsize
                    + b1.size * 4 + b2.size * 4)
    vmem_est = weight_bytes + 2 * tb * in_size * x.dtype.itemsize + 2 * tb * out_size * 4
    if vmem_est > _VMEM_TILE_BUDGET:
        compiler_params = pltpu.CompilerParams(
            dimension_semantics=("parallel",),
            vmem_limit_bytes=min(int(vmem_est) + (8 << 20), 48 << 20))
    else:
        compiler_params = pltpu.CompilerParams(dimension_semantics=("parallel",))

    h_p = pl.pallas_call(
        kernel,
        out_shape=jax.ShapeDtypeStruct((batch_p, out_size), jnp.float32),
        grid=(num_blocks,),
        in_specs=[
            pl.BlockSpec((tb, in_size), lambda i: (i, 0)),      # x streams
            pl.BlockSpec((in_size, hidden), lambda i: (0, 0)),  # weights stay
            pl.BlockSpec((1, hidden), lambda i: (0, 0)),        # resident in
            pl.BlockSpec((hidden, out_size), lambda i: (0, 0)), # VMEM across
            pl.BlockSpec((1, out_size), lambda i: (0, 0)),      # iterations
        ],
        out_specs=pl.BlockSpec((tb, out_size), lambda i: (i, 0)),
        compiler_params=compiler_params,
    )(x_p, w1, b1, w2, b2)

    return h_p[:batch] if batch_p != batch else h_p


def simple_model_forward(x, lace, w1, b1, w2, b2, **kwargs):
    """SimpleModel.forward(x, lace) -> (g, h)."""
    g = lace  # passthrough, no kernel needed
    h = two_layer_nn(x, w1, b1, w2, b2, **kwargs)
    return g, h


# TODO(synk): forward_y (x + k*g + h @ linear_layer) is a separate method on the
# module; only forward() is required here, so it is not fused into this kernel.


if __name__ == "__main__":
    # Small shapes consistent with the module: x is [batch, input_size].
    batch = 8
    input_size = 16
    hidden_size = 32
    output_size = 8

    key = jax.random.PRNGKey(0)
    kx, kl, k1, k2, k3, k4, kx2 = jax.random.split(key, 7)

    x = jax.random.normal(kx, (batch, input_size), dtype=jnp.float32)
    lace = jax.random.normal(kl, (batch, output_size), dtype=jnp.float32)

    # Deterministic parameter init (nn.Linear shapes, stored transposed).
    w1 = jax.random.normal(k1, (input_size, hidden_size), dtype=jnp.float32) * 0.1
    b1 = jax.random.normal(k2, (1, hidden_size), dtype=jnp.float32) * 0.1
    w2 = jax.random.normal(k3, (hidden_size, output_size), dtype=jnp.float32) * 0.1
    b2 = jax.random.normal(k4, (1, output_size), dtype=jnp.float32) * 0.1

    # --- Path 1: tiny batch, single grid-less VMEM-resident call (f32) ---
    g, h = simple_model_forward(x, lace, w1, b1, w2, b2)
    jax.block_until_ready((g, h))

    h_ref = jnp.maximum(x @ w1 + b1, 0.0) @ w2 + b2
    assert g.shape == lace.shape and jnp.array_equal(g, lace)
    assert h.shape == (batch, output_size)
    assert jnp.allclose(h, h_ref, atol=1e-5, rtol=1e-5)

    # --- Path 2: larger batch exercising the tiled "parallel" grid (>=2 blocks
    # for v7x megacore) with weights stored once in bf16 and x cast in-kernel ---
    big_batch = 1024
    x_big = jax.random.normal(kx2, (big_batch, input_size), dtype=jnp.float32)
    w1_lp = w1.astype(jnp.bfloat16)   # "stored at init" in low precision,
    w2_lp = w2.astype(jnp.bfloat16)   # outside the per-call hot path
    h_big = two_layer_nn(x_big, w1_lp, b1, w2_lp, b2,
                         block_batch=4096, compute_dtype=jnp.bfloat16)
    jax.block_until_ready(h_big)

    h_big_ref = jnp.maximum(x_big @ w1 + b1, 0.0) @ w2 + b2
    assert h_big.shape == (big_batch, output_size)
    assert jnp.allclose(h_big, h_big_ref, atol=5e-2, rtol=5e-2)

    print("KERNEL_OK")
</pallas_src>

<mosaic_0001>
module attributes {stable_mosaic.version = 11 : i64} {
  func.func @_two_layer_nn_kernel(%arg0: memref<8x16xf32, #tpu.memory_space<vmem>>, %arg1: memref<16x32xf32, #tpu.memory_space<vmem>>, %arg2: memref<1x32xf32, #tpu.memory_space<vmem>>, %arg3: memref<32x8xf32, #tpu.memory_space<vmem>>, %arg4: memref<1x8xf32, #tpu.memory_space<vmem>>, %arg5: memref<8x8xf32, #tpu.memory_space<vmem>>) attributes {dimension_semantics = [], scalar_prefetch = 0 : i64, scratch_operands = 0 : i64, tpu.core_type = #tpu.core_type<tc>} {
    %c0 = arith.constant 0 : index
    %c0_0 = arith.constant 0 : index
    %0 = vector.load %arg0[%c0, %c0_0] : memref<8x16xf32, #tpu.memory_space<vmem>>, vector<8x16xf32>
    %c0_1 = arith.constant 0 : index
    %c0_2 = arith.constant 0 : index
    %1 = vector.load %arg1[%c0_1, %c0_2] : memref<16x32xf32, #tpu.memory_space<vmem>>, vector<16x32xf32>
    %cst = arith.constant dense<0.000000e+00> : vector<8x32xf32>
    %2 = tpu.matmul %0, %1, %cst {dimension_numbers = #tpu.dot_dimension_numbers<[1], [0], [0], [1], [0, 0, 1, 1], [], []>} : vector<8x16xf32>, vector<16x32xf32>, vector<8x32xf32> -> vector<8x32xf32>
    %c0_3 = arith.constant 0 : index
    %c0_4 = arith.constant 0 : index
    %3 = vector.load %arg2[%c0_3, %c0_4] : memref<1x32xf32, #tpu.memory_space<vmem>>, vector<1x32xf32>
    %4 = vector.broadcast %3 : vector<1x32xf32> to vector<8x32xf32>
    %5 = arith.addf %2, %4 : vector<8x32xf32>
    %cst_5 = arith.constant 0.000000e+00 : f32
    %6 = vector.broadcast %cst_5 : f32 to vector<8x32xf32>
    %7 = arith.maximumf %5, %6 : vector<8x32xf32>
    %c0_6 = arith.constant 0 : index
    %c0_7 = arith.constant 0 : index
    %8 = vector.load %arg3[%c0_6, %c0_7] : memref<32x8xf32, #tpu.memory_space<vmem>>, vector<32x8xf32>
    %cst_8 = arith.constant dense<0.000000e+00> : vector<8x8xf32>
    %9 = tpu.matmul %7, %8, %cst_8 {dimension_numbers = #tpu.dot_dimension_numbers<[1], [0], [0], [1], [0, 0, 1, 1], [], []>} : vector<8x32xf32>, vector<32x8xf32>, vector<8x8xf32> -> vector<8x8xf32>
    %c0_9 = arith.constant 0 : index
    %c0_10 = arith.constant 0 : index
    %10 = vector.load %arg4[%c0_9, %c0_10] : memref<1x8xf32, #tpu.memory_space<vmem>>, vector<1x8xf32>
    %11 = vector.broadcast %10 : vector<1x8xf32> to vector<8x8xf32>
    %12 = arith.addf %9, %11 : vector<8x8xf32>
    %c0_11 = arith.constant 0 : index
    %c0_12 = arith.constant 0 : index
    %13 = vector.load %arg5[%c0_11, %c0_12] : memref<8x8xf32, #tpu.memory_space<vmem>>, vector<8x8xf32>
    tpu.vector_store %arg5[%c0_11, %c0_12], %12 {strides = array<i32>} : memref<8x8xf32, #tpu.memory_space<vmem>>, vector<8x8xf32>,
    return
  }
}

</mosaic_0001>

<bundles_post_ra>
// kernel: tpu_custom_call.1
= control target key start
LH: loop header
LB: loop body
LE: loop exit
PB: predicated region body
PF: predicated region fallthrough
CT: control target
= control target key end

     0   :  { %v274_v2 = vmov 0.0|0.0   ;;  %vm275_vm0 = vmmov 0   ;;  %v276_v4 = vmov 0.0   ;;  %s347_s0 = inlined_call_operand.vmem [shape: f32[8,16], index: 0, kind: input, shape index: {}]   ;;  %s348_s1 = inlined_call_operand.vmem [shape: f32[16,32], index: 1, kind: input, shape index: {}]   ;;  %s349_s2 = inlined_call_operand.vmem [shape: f32[1,32], index: 2, kind: input, shape index: {}]   ;;  %s350_s3 = inlined_call_operand.vmem [shape: f32[32,8], index: 3, kind: input, shape index: {}]   ;;  %s351_s4 = inlined_call_operand.vmem [shape: f32[1,8], index: 4, kind: input, shape index: {}]   ;;  %s352_s5 = inlined_call_operand.hbm [shape: f32[8,8], index: 5, kind: output, shape index: {}]  }
   0x1   :  { %v22_v0 = vld [vmem:[%s348_s1] sm:$0xff]  ;;  %v23_v1 = vld [vmem:[%s348_s1 + $0x8] sm:$0xff]  ;;  %237 = vmatprep.subr.bf16.mxu0 %v274_v2  ;;  %223 = vmatprep.mubr.msk.f32.mxu0 %vm275_vm0, %v276_v4 }
   0x2   :  { %v238_v3 = vpack.c.bf16 %v23_v1, %v22_v0  ;;  %v106_v5 = vld [vmem:[%s350_s3] sm:$0xff]  ;;  %v107_v6 = vld [vmem:[%s350_s3 + $0x8] sm:$0xff]  ;;  %240 = vmatprep.subr.bf16.mxu1 %v274_v2  ;;  %234 = vmatprep.mubr.msk.f32.mxu1 %vm275_vm0, %v276_v4 }
   0x3   :  { %v241_v7 = vpack.c.bf16 %v107_v6, %v106_v5 }
   0x4   :  { %10 = vsyncpa [#allocation3], 0  ;;  %239 = vmatpush3.bf16.msra.mxu0 %v238_v3  ;;  %v21_v8 = vld [vmem:[%s347_s0] sm:$0xff]  ;;  %vm31_vm1 = vcmask 130048   ;;  %v108_v9 = vld [vmem:[%s350_s3 + $0x10] sm:$0xff]  ;;  %vm117_vm2 = vcmask 261120  }
   0x5   :  { %242 = vmatpush3.bf16.msra.mxu1 %v241_v7  ;;  %v109_v10 = vld [vmem:[%s350_s3 + $0x18] sm:$0xff]  ;;  %v207_v12 = vld [vmem:[%s349_s2] ss:$0 sm:$0xff]  ;;  %s277_s9 = smov [#allocation2]   ;;  %vm191_vm3 = vcmask 64512  }
   0x6   :  { %243 = vmatprep.subr.bf16.mxu1 %v274_v2  ;;  %v244_v11 = vpack.c.bf16 %v109_v10, %v108_v9  ;;  %v209_v17 = vld [vmem:[%s351_s4] ss:$0 sm:$0xff]  ;;  %s199_s10 = sshll.u32 %s277_s9, 4  ;;  %s200_s10 = int_to_ptr.vmem [resolvable:$true] %s199_s10 }
   0x7   :  { %224 = vmatmul.mubr.msk.f32.vlgmr.msra.gmra.mrb[0].mxu0 %vm31_vm1, %v21_v8  ;;  %s250_s3 = scalar_lea.vmem %s200_s10, 128  ;;  %p255_p1 = scmp.lt.s32.totalorder %s200_s10, %s200_s10 }
   0x8   :  { %p251_p0 = scmp.ne.s32.totalorder %s200_s10, %s250_s3  ;;  %p256_p2 = scmp.lt.s32.totalorder %s250_s3, %s250_s3 }
   0x9   :  { %245 = vmatpush3.bf16.msra.mxu1 %v244_v11 }
   0xa   :  { %p257_p3 = por %p256_p2, %p255_p1 }
   0xc   :  { %p258_p4 = pnand %p257_p3, %p251_p0 }
  0xda   :  { %v101_v13 = vpop.f32.mrb[0].mxu0 }
  0xdb   :  { %v102_v14 = vadd.f32 %v207_v12, %v101_v13  ;;  %v225_v15 = vpop.f32.mrb[1].mxu0 }
  0xdd   :  { %v105_v16 = vmax.f32 %v102_v14, 0.0 }
  0xdf   :  { %235 = vmatmul.mubr.msk.f32.vlgmr.msra.gmra.mrb[0].mxu1 %vm117_vm2, %v105_v16 }
 0x1b2   :  { %v187_v18 = vpop.f32.mrb[0].mxu1 }
 0x1b3   :  { %v188_v19 = vadd.f32 %v209_v17, %v187_v18  ;;  %v236_v20 = vpop.f32.mrb[1].mxu1 }
 0x1b5   :  { %192 = vst.msk [vmem:[#allocation2] sm:$0xff] %vm191_vm3, %v188_v19 }
 0x1b6   :  { %261 = shalt.err (!%p258_p4)
}
 0x1b7   :  { %s262_s12 = scalar_lea.hbm %s352_s5, 128 }
 0x1b8   :  { %p263_p5 = scmp.ne.s32.totalorder %s352_s5, %s262_s12  ;;  %p266_p6 = scmp.lt.u32.totalorder %s262_s12, %s352_s5 }
 0x1ba   :  { %p268_p7 = pnand %p266_p6, %p263_p5 }
 0x1bc   :  { %271 = shalt.err (!%p268_p7)
}
 0x1bd   :  { %202 = dma.vmem_to_hbm [thread:$0]  %s200_s10, 128, %s352_s5, [#allocation3]  }
 0x1be   :  { %272 = dma.done.wait [#allocation3], 128  }
 0x1bf   :  { %273 = vsyncadd [#allocation3], 4294967168 }
 0x1c0   :  { %206 = vsyncpa [#allocation3], 1 }

</bundles_post_ra>
